<compile_context>
chip_gen: v6e
topology: v6e:2x2x1
jax: 0.10.0
libtpu: 0.0.40
codegen_flags: <defaults>
</compile_context>

<pallas_src>
import functools

import jax
import jax.numpy as jnp
from jax.experimental import pallas as pl
from jax.experimental.pallas import tpu as pltpu


def _round_up(a, b):
    return (a + b - 1) // b * b


def _cdiv(a, b):
    return -(-a // b)


def _tpu_params():
    """Best-effort (vmem_capacity_bytes, tensorcores_per_chip) query."""
    vmem_cap = None
    ncore = None
    try:
        info = pltpu.get_tpu_info()
        try:
            v = int(getattr(info, "vmem_capacity_bytes"))
            if v > 0:
                vmem_cap = v
        except Exception:
            pass
        for attr in ("num_tensorcores", "tensorcores_per_chip", "num_cores",
                     "cores_per_chip", "core_count"):
            try:
                n = int(getattr(info, attr))
                if n > 0:
                    ncore = n
                    break
            except Exception:
                pass
    except Exception:
        pass
    kind = ""
    try:
        kind = jax.devices()[0].device_kind.lower()
    except Exception:
        pass
    if ncore is None:
        # v5e / v6e have a single TensorCore; v7x has two per chip.
        ncore = 2 if "v7" in kind else 1
    if vmem_cap is None:
        if any(t in kind for t in ("v5e", "v5 lite", "v5lite", "v6")):
            vmem_cap = 128 << 20
        else:
            vmem_cap = 64 << 20   # conservative default (= v7x physical VMEM)
    return int(vmem_cap), int(ncore)


def _soft_dice_kernel(x_ref, y_ref, out_ref, sxy_ref, sxpy_ref, *,
                      smooth, bc_total, hw_total, tbc, tcol,
                      blocks_per_core, col_ragged):
    c = pl.program_id(0)      # core (parallel) axis
    j = pl.program_id(1)      # row block within this core
    k = pl.program_id(2)      # column (reduction) block
    nk = pl.num_programs(2)

    # Zero this core's partial-sum output tile once.
    @pl.when((j == 0) & (k == 0))
    def _():
        out_ref[...] = jnp.zeros_like(out_ref)

    # Zero the per-row accumulators at the start of every row block.
    @pl.when(k == 0)
    def _():
        sxy_ref[...] = jnp.zeros_like(sxy_ref)
        sxpy_ref[...] = jnp.zeros_like(sxpy_ref)

    x = x_ref[...].astype(jnp.float32)
    y = y_ref[...].astype(jnp.float32)

    # The array is not padded in HBM, so a ragged last column block contains
    # unspecified data in the tail lanes; zero it before the sums.
    if col_ragged:
        col_ids = jax.lax.broadcasted_iota(jnp.int32, (1, tcol), 1) + k * tcol
        lane_ok = col_ids < hw_total          # all-True for non-last k blocks
        x = jnp.where(lane_ok, x, 0.0)
        y = jnp.where(lane_ok, y, 0.0)

    # Per-row partial sums for this column block (sx+sy merged).
    sxy_ref[...] += jnp.sum(x * y, axis=-1, keepdims=True)
    sxpy_ref[...] += jnp.sum(x + y, axis=-1, keepdims=True)

    # Last column block: finish per-row dice, mask rows past B*C, accumulate.
    @pl.when(k == nk - 1)
    def _():
        s = jnp.float32(smooth)
        dc = (2.0 * sxy_ref[...] + s) / (sxpy_ref[...] + s)
        row0 = (c * blocks_per_core + j) * tbc
        row_ids = jax.lax.broadcasted_iota(jnp.int32, (tbc, 1), 0) + row0
        dc = jnp.where(row_ids < bc_total, dc, 0.0)
        out_ref[...] = out_ref[...] + jnp.sum(dc)


def soft_dice_loss(x, y, smooth=1.0, *, target_block_bytes=None):
    """Pallas implementation of SoftDiceLoss(smooth, dims=(-2, -1)).forward(x, y)."""
    assert x.shape == y.shape and x.ndim == 4, "expected NCHW inputs of equal shape"
    B, C, H, W = x.shape
    bc = B * C
    hw = H * W

    x_item = jnp.dtype(x.dtype).itemsize
    y_item = jnp.dtype(y.dtype).itemsize
    itemsize = max(x_item, y_item)
    gran = max(8, 32 // itemsize)        # row granularity: f32->8, bf16->16, int8->32

    vmem_cap, ncore = _tpu_params()
    if target_block_bytes is None:
        # ~8 MiB per input block on 128 MiB-VMEM chips, ~4 MiB on 64 MiB v7x.
        target_block_bytes = (8 << 20) if vmem_cap >= (96 << 20) else (4 << 20)
    # Keep 2 inputs x 2 pipeline buffers within ~half of physical VMEM.
    target_block_bytes = int(min(target_block_bytes, vmem_cap // 8))

    # ---- column tiling: lane-dense (x128), evenly split to minimize the tail ----
    hw128 = _round_up(hw, 128)
    row_bytes = hw128 * itemsize
    if gran * row_bytes <= target_block_bytes:
        tcol = hw128
        tbc_max = max(gran, (target_block_bytes // row_bytes) // gran * gran)
    else:
        tbc_max = gran
        tcol_max = max(128, (target_block_bytes // (gran * itemsize)) // 128 * 128)
        n_col_even = _cdiv(hw128, tcol_max)
        tcol = _round_up(_cdiv(hw128, n_col_even), 128)
    n_col = _cdiv(hw, tcol)
    col_ragged = (hw % tcol) != 0

    # ---- row tiling: smallest gran-multiple blocks covering bc, split per core ----
    tbc_max = int(min(tbc_max, _round_up(bc, gran)))
    n_rb = _cdiv(bc, tbc_max)
    ncore = max(1, min(ncore, n_rb))
    blocks_per_core = _cdiv(n_rb, ncore)
    tbc = _round_up(_cdiv(bc, ncore * blocks_per_core), gran)
    n_rb_valid = _cdiv(bc, tbc)          # row blocks that actually exist in HBM

    # No host-side padding: only a cheap reshape of the contiguous NCHW buffer.
    xf = x.reshape(bc, hw)
    yf = y.reshape(bc, hw)

    if ncore * blocks_per_core > n_rb_valid:
        # A few (core, j) positions are fully past the array; clamp their block
        # index (their rows are masked out of the dice mean at finalize).
        in_map = lambda c, j, k: (jnp.minimum(c * blocks_per_core + j,
                                              n_rb_valid - 1), k)
    else:
        in_map = lambda c, j, k: (c * blocks_per_core + j, k)

    kernel = functools.partial(
        _soft_dice_kernel, smooth=float(smooth), bc_total=bc, hw_total=hw,
        tbc=tbc, tcol=tcol, blocks_per_core=blocks_per_core,
        col_ragged=col_ragged)

    # 2 inputs x 2 pipeline buffers (native dtype on the wire) + headroom,
    # capped below physical VMEM (<= 56 MiB on 64 MiB v7x, <= 112 MiB on v5e/v6e).
    vmem_need = 2 * tbc * tcol * (x_item + y_item)
    vmem_limit = int(min(max(vmem_need + (8 << 20), 16 << 20), (vmem_cap // 8) * 7))

    bytes_accessed = bc * hw * (x_item + y_item)
    cost = pl.CostEstimate(flops=4 * bc * hw, transcendentals=0,
                           bytes_accessed=bytes_accessed)

    # NOTE(v7x): plain "parallel" on the leading axis should shard the BC axis
    # across both TensorCores; if a trace shows one TC idle, switch this axis
    # to pltpu.CORE_PARALLEL.
    partials = pl.pallas_call(
        kernel,
        out_shape=jax.ShapeDtypeStruct((ncore, 8, 128), jnp.float32),
        grid_spec=pltpu.PrefetchScalarGridSpec(
            num_scalar_prefetch=0,
            grid=(ncore, blocks_per_core, n_col),
            in_specs=[
                pl.BlockSpec((tbc, tcol), in_map),
                pl.BlockSpec((tbc, tcol), in_map),
            ],
            out_specs=pl.BlockSpec((1, 8, 128), lambda c, j, k: (c, 0, 0)),
            scratch_shapes=[
                pltpu.VMEM((tbc, 1), jnp.float32),   # sum(x*y)  per row
                pltpu.VMEM((tbc, 1), jnp.float32),   # sum(x+y)  per row
            ],
        ),
        compiler_params=pltpu.CompilerParams(
            dimension_semantics=("parallel", "arbitrary", "arbitrary"),
            vmem_limit_bytes=vmem_limit,
        ),
        cost_estimate=cost,
    )(xf, yf)

    # Each core broadcast its partial dice sum over its whole (8,128) tile.
    dice_sum = jnp.sum(partials[:, 0, 0])
    return jnp.float32(1.0) - dice_sum / jnp.float32(bc)


def _soft_dice_loss_ref(x, y, smooth=1.0):
    x = x.astype(jnp.float32)
    y = y.astype(jnp.float32)
    tp = (x * y).sum((-2, -1))
    fp = (x * (1.0 - y)).sum((-2, -1))
    fn = ((1.0 - x) * y).sum((-2, -1))
    dc = (2.0 * tp + smooth) / (2.0 * tp + fp + fn + smooth)
    return 1.0 - dc.mean()


if __name__ == "__main__":
    key = jax.random.PRNGKey(0)
    k1, k2, k3, k4, k5, k6 = jax.random.split(key, 6)

    # Case 1: well-aligned shape, f32 probabilities vs {0,1} targets.
    B, C, H, W = 2, 4, 16, 16
    x1 = jax.random.uniform(k1, (B, C, H, W), dtype=jnp.float32)
    y1 = (jax.random.uniform(k2, (B, C, H, W)) > 0.5).astype(jnp.float32)
    loss1 = soft_dice_loss(x1, y1, smooth=1.0)
    jax.block_until_ready(loss1)
    ref1 = _soft_dice_loss_ref(x1, y1, 1.0)
    assert jnp.allclose(loss1, ref1, atol=1e-5, rtol=1e-5), (loss1, ref1)

    # Case 2: ragged rows + ragged lanes with bf16 inputs (no host pad,
    # in-kernel lane mask + row mask, dtype-aware 16-row blocks).
    x2 = jax.random.uniform(k3, (2, 3, 10, 12), dtype=jnp.float32).astype(jnp.bfloat16)
    y2 = (jax.random.uniform(k4, (2, 3, 10, 12)) > 0.5).astype(jnp.bfloat16)
    loss2 = soft_dice_loss(x2, y2, smooth=1.0)
    jax.block_until_ready(loss2)
    ref2 = _soft_dice_loss_ref(x2, y2, 1.0)
    assert jnp.allclose(loss2, ref2, atol=1e-5, rtol=1e-5), (loss2, ref2)

    # Case 3: tiny block budget forces multi-row-block + multi-column-block
    # reduction (exercises scratch k-accumulation, ragged last column block,
    # ragged last row block, and the clamped index map on multi-TC chips).
    x3 = jax.random.uniform(k5, (4, 5, 10, 20), dtype=jnp.float32)
    y3 = jax.random.uniform(k6, (4, 5, 10, 20), dtype=jnp.float32)
    loss3 = soft_dice_loss(x3, y3, smooth=1.0, target_block_bytes=4096)
    jax.block_until_ready(loss3)
    ref3 = _soft_dice_loss_ref(x3, y3, 1.0)
    assert jnp.allclose(loss3, ref3, atol=1e-5, rtol=1e-5), (loss3, ref3)

    print("KERNEL_OK")
</pallas_src>

<mosaic_0001>
module attributes {stable_mosaic.version = 11 : i64} {
  func.func @_soft_dice_kernel(%arg0: i32, %arg1: i32, %arg2: i32, %arg3: memref<8x256xf32, #tpu.memory_space<vmem>>, %arg4: memref<8x256xf32, #tpu.memory_space<vmem>>, %arg5: memref<1x8x128xf32, #tpu.memory_space<vmem>>, %arg6: memref<8x1xf32, #tpu.memory_space<vmem>>, %arg7: memref<8x1xf32, #tpu.memory_space<vmem>>) attributes {dimension_semantics = [#tpu.dimension_semantics<parallel>, #tpu.dimension_semantics<arbitrary>, #tpu.dimension_semantics<arbitrary>], iteration_bounds = array<i64: 1, 1, 1>, scalar_prefetch = 0 : i64, scratch_operands = 2 : i64, tpu.core_type = #tpu.core_type<tc>, window_params = [{transform_indices = @transform_0, window_bounds = array<i64: 8, 256>}, {transform_indices = @transform_1, window_bounds = array<i64: 8, 256>}, {transform_indices = @transform_2, window_bounds = array<i64: 1, 8, 128>}]} {
    %c0_i32 = arith.constant 0 : i32
    %0 = arith.cmpi eq, %arg1, %c0_i32 : i32
    %c0_i32_0 = arith.constant 0 : i32
    %1 = arith.cmpi eq, %arg2, %c0_i32_0 : i32
    %2 = arith.andi %0, %1 : i1
    %3 = arith.extui %2 : i1 to i32
    %c0_i32_1 = arith.constant 0 : i32
    %4 = arith.cmpi ne, %3, %c0_i32_1 : i32
    scf.if %4 {
      %cst_18 = arith.constant 0.000000e+00 : f32
      %25 = vector.broadcast %cst_18 : f32 to vector<1x8x128xf32>
      %c0_19 = arith.constant 0 : index
      %c0_20 = arith.constant 0 : index
      %c0_21 = arith.constant 0 : index
      %26 = vector.load %arg5[%c0_19, %c0_20, %c0_21] : memref<1x8x128xf32, #tpu.memory_space<vmem>>, vector<1x8x128xf32>
      tpu.vector_store %arg5[%c0_19, %c0_20, %c0_21], %25 {strides = array<i32>} : memref<1x8x128xf32, #tpu.memory_space<vmem>>, vector<1x8x128xf32>,
    } else {
    }
    %c0_i32_2 = arith.constant 0 : i32
    %5 = arith.cmpi eq, %arg2, %c0_i32_2 : i32
    %6 = arith.extui %5 : i1 to i32
    %c0_i32_3 = arith.constant 0 : i32
    %7 = arith.cmpi ne, %6, %c0_i32_3 : i32
    scf.if %7 {
      %cst_18 = arith.constant 0.000000e+00 : f32
      %25 = vector.broadcast %cst_18 : f32 to vector<8x1xf32>
      %c0_19 = arith.constant 0 : index
      %c0_20 = arith.constant 0 : index
      %26 = vector.load %arg6[%c0_19, %c0_20] : memref<8x1xf32, #tpu.memory_space<vmem>>, vector<8x1xf32>
      tpu.vector_store %arg6[%c0_19, %c0_20], %25 {strides = array<i32>} : memref<8x1xf32, #tpu.memory_space<vmem>>, vector<8x1xf32>,
      %cst_21 = arith.constant 0.000000e+00 : f32
      %27 = vector.broadcast %cst_21 : f32 to vector<8x1xf32>
      %c0_22 = arith.constant 0 : index
      %c0_23 = arith.constant 0 : index
      %28 = vector.load %arg7[%c0_22, %c0_23] : memref<8x1xf32, #tpu.memory_space<vmem>>, vector<8x1xf32>
      tpu.vector_store %arg7[%c0_22, %c0_23], %27 {strides = array<i32>} : memref<8x1xf32, #tpu.memory_space<vmem>>, vector<8x1xf32>,
    } else {
    }
    %c0 = arith.constant 0 : index
    %c0_4 = arith.constant 0 : index
    %8 = vector.load %arg3[%c0, %c0_4] : memref<8x256xf32, #tpu.memory_space<vmem>>, vector<8x256xf32>
    %c0_5 = arith.constant 0 : index
    %c0_6 = arith.constant 0 : index
    %9 = vector.load %arg4[%c0_5, %c0_6] : memref<8x256xf32, #tpu.memory_space<vmem>>, vector<8x256xf32>
    %c0_7 = arith.constant 0 : index
    %c0_8 = arith.constant 0 : index
    %10 = vector.load %arg6[%c0_7, %c0_8] : memref<8x1xf32, #tpu.memory_space<vmem>>, vector<8x1xf32>
    %11 = arith.mulf %8, %9 : vector<8x256xf32>
    %cst = arith.constant dense<0.000000e+00> : vector<8xf32>
    %12 = vector.multi_reduction <add>, %11, %cst [1] : vector<8x256xf32> to vector<8xf32>
    %13 = vector.shape_cast %12 : vector<8xf32> to vector<8x1xf32>
    %14 = arith.addf %10, %13 : vector<8x1xf32>
    %c0_9 = arith.constant 0 : index
    %c0_10 = arith.constant 0 : index
    %15 = vector.load %arg6[%c0_9, %c0_10] : memref<8x1xf32, #tpu.memory_space<vmem>>, vector<8x1xf32>
    tpu.vector_store %arg6[%c0_9, %c0_10], %14 {strides = array<i32>} : memref<8x1xf32, #tpu.memory_space<vmem>>, vector<8x1xf32>,
    %c0_11 = arith.constant 0 : index
    %c0_12 = arith.constant 0 : index
    %16 = vector.load %arg7[%c0_11, %c0_12] : memref<8x1xf32, #tpu.memory_space<vmem>>, vector<8x1xf32>
    %17 = arith.addf %8, %9 : vector<8x256xf32>
    %cst_13 = arith.constant dense<0.000000e+00> : vector<8xf32>
    %18 = vector.multi_reduction <add>, %17, %cst_13 [1] : vector<8x256xf32> to vector<8xf32>
    %19 = vector.shape_cast %18 : vector<8xf32> to vector<8x1xf32>
    %20 = arith.addf %16, %19 : vector<8x1xf32>
    %c0_14 = arith.constant 0 : index
    %c0_15 = arith.constant 0 : index
    %21 = vector.load %arg7[%c0_14, %c0_15] : memref<8x1xf32, #tpu.memory_space<vmem>>, vector<8x1xf32>
    tpu.vector_store %arg7[%c0_14, %c0_15], %20 {strides = array<i32>} : memref<8x1xf32, #tpu.memory_space<vmem>>, vector<8x1xf32>,
    %c0_i32_16 = arith.constant 0 : i32
    %22 = arith.cmpi eq, %arg2, %c0_i32_16 : i32
    %23 = arith.extui %22 : i1 to i32
    %c0_i32_17 = arith.constant 0 : i32
    %24 = arith.cmpi ne, %23, %c0_i32_17 : i32
    scf.if %24 {
      %c0_18 = arith.constant 0 : index
      %c0_19 = arith.constant 0 : index
      %25 = vector.load %arg6[%c0_18, %c0_19] : memref<8x1xf32, #tpu.memory_space<vmem>>, vector<8x1xf32>
      %cst_20 = arith.constant 2.000000e+00 : f32
      %26 = vector.broadcast %cst_20 : f32 to vector<8x1xf32>
      %27 = arith.mulf %26, %25 : vector<8x1xf32>
      %cst_21 = arith.constant 1.000000e+00 : f32
      %28 = vector.broadcast %cst_21 : f32 to vector<8x1xf32>
      %29 = arith.addf %27, %28 : vector<8x1xf32>
      %c0_22 = arith.constant 0 : index
      %c0_23 = arith.constant 0 : index
      %30 = vector.load %arg7[%c0_22, %c0_23] : memref<8x1xf32, #tpu.memory_space<vmem>>, vector<8x1xf32>
      %cst_24 = arith.constant 1.000000e+00 : f32
      %31 = vector.broadcast %cst_24 : f32 to vector<8x1xf32>
      %32 = arith.addf %30, %31 : vector<8x1xf32>
      %33 = arith.divf %29, %32 : vector<8x1xf32>
      %c1_i32 = arith.constant 1 : i32
      %34 = arith.muli %arg0, %c1_i32 : i32
      %35 = arith.addi %34, %arg1 : i32
      %c8_i32 = arith.constant 8 : i32
      %36 = arith.muli %35, %c8_i32 : i32
      %37 = tpu.iota {dimensions = array<i32: 0>} : vector<8x1xi32>
      %38 = vector.broadcast %36 : i32 to vector<8x1xi32>
      %39 = arith.addi %37, %38 : vector<8x1xi32>
      %c8_i32_25 = arith.constant 8 : i32
      %40 = vector.broadcast %c8_i32_25 : i32 to vector<8x1xi32>
      %41 = arith.cmpi slt, %39, %40 : vector<8x1xi32>
      %cst_26 = arith.constant 0.000000e+00 : f32
      %42 = vector.broadcast %cst_26 : f32 to vector<8x1xf32>
      %43 = arith.select %41, %33, %42 : vector<8x1xi1>, vector<8x1xf32>
      %c0_27 = arith.constant 0 : index
      %c0_28 = arith.constant 0 : index
      %c0_29 = arith.constant 0 : index
      %44 = vector.load %arg5[%c0_27, %c0_28, %c0_29] : memref<1x8x128xf32, #tpu.memory_space<vmem>>, vector<1x8x128xf32>
      %45 = vector.shape_cast %43 : vector<8x1xf32> to vector<1x8x1xf32>
      %cst_30 = arith.constant dense<0.000000e+00> : vector<1xf32>
      %46 = vector.multi_reduction <add>, %45, %cst_30 [1, 2] : vector<1x8x1xf32> to vector<1xf32>
      %47 = vector.shape_cast %46 : vector<1xf32> to vector<1x1x1xf32>
      %48 = vector.extract %47[0, 0, 0] : f32 from vector<1x1x1xf32>
      %49 = vector.broadcast %48 : f32 to vector<1x8x128xf32>
      %50 = arith.addf %44, %49 : vector<1x8x128xf32>
      %c0_31 = arith.constant 0 : index
      %c0_32 = arith.constant 0 : index
      %c0_33 = arith.constant 0 : index
      %51 = vector.load %arg5[%c0_31, %c0_32, %c0_33] : memref<1x8x128xf32, #tpu.memory_space<vmem>>, vector<1x8x128xf32>
      tpu.vector_store %arg5[%c0_31, %c0_32, %c0_33], %50 {strides = array<i32>} : memref<1x8x128xf32, #tpu.memory_space<vmem>>, vector<1x8x128xf32>,
    } else {
    }
    return
  }
  func.func @transform_0(%arg0: i32, %arg1: i32, %arg2: i32) -> (i32, i32) {
    %c1_i32 = arith.constant 1 : i32
    %0 = arith.muli %arg0, %c1_i32 : i32
    %1 = arith.addi %0, %arg1 : i32
    %c0_i32 = arith.constant 0 : i32
    return %1, %arg2 : i32, i32
  }
  func.func @transform_1(%arg0: i32, %arg1: i32, %arg2: i32) -> (i32, i32) {
    %c1_i32 = arith.constant 1 : i32
    %0 = arith.muli %arg0, %c1_i32 : i32
    %1 = arith.addi %0, %arg1 : i32
    %c0_i32 = arith.constant 0 : i32
    return %1, %arg2 : i32, i32
  }
  func.func @transform_2(%arg0: i32, %arg1: i32, %arg2: i32) -> (i32, i32, i32) {
    %c0_i32 = arith.constant 0 : i32
    %c0_i32_0 = arith.constant 0 : i32
    %c0_i32_1 = arith.constant 0 : i32
    return %arg0, %c0_i32, %c0_i32_0 : i32, i32, i32
  }
}

</mosaic_0001>

<bundles_post_ra>
// kernel: tpu_custom_call.1
= control target key start
LH: loop header
LB: loop body
LE: loop exit
PB: predicated region body
PF: predicated region fallthrough
CT: control target
= control target key end

     0   :  { %7 = vsyncpa [#allocation5], 0  ;;  %s235_s0 = inlined_call_operand.hbm [shape: f32[8,256], index: 0, kind: input, shape index: {}]   ;;  %s236_s1 = inlined_call_operand.hbm [shape: f32[8,256], index: 1, kind: input, shape index: {}]   ;;  %s237_s2 = inlined_call_operand.hbm [shape: f32[1,8,128], index: 2, kind: output, shape index: {}]  }
   0x1   :  { %8 = vsyncpa [#allocation8], 0 }
   0x2   :  { %9 = vsyncpa [#allocation6], 0  ;;  %s202_s9 = smov [#allocation4]   ;;  %s203_s11 = smov [#allocation7]  }
   0x3   :  { %s20_s10 = sshll.u32 %s202_s9, 4  ;;  %s34_s12 = sshll.u32 %s203_s11, 4  ;;  %s21_s10 = int_to_ptr.vmem [resolvable:$true] %s20_s10  ;;  %s35_s12 = int_to_ptr.vmem [resolvable:$true] %s34_s12 }
   0x4   :  { %s144_s13 = scalar_lea.vmem %s21_s10, 256  ;;  %p149_p1 = scmp.lt.s32.totalorder %s21_s10, %s21_s10 }
   0x5   :  { %p145_p0 = scmp.ne.s32.totalorder %s21_s10, %s144_s13  ;;  %p150_p2 = scmp.lt.s32.totalorder %s144_s13, %s144_s13 }
   0x7   :  { %p151_p3 = por %p150_p2, %p149_p1 }
   0x9   :  { %p152_p4 = pnand %p151_p3, %p145_p0 }
   0xb   :  { %155 = shalt.err (!%p152_p4)
}
   0xc   :  { %23 = dma.hbm_to_vmem [thread:$0]  %s235_s0, 256, %s21_s10, [#allocation5]  }
   0xd   :  { %s164_s16 = scalar_lea.vmem %s35_s12, 256  ;;  %p169_p6 = scmp.lt.s32.totalorder %s35_s12, %s35_s12 }
   0xe   :  { %p165_p5 = scmp.ne.s32.totalorder %s35_s12, %s164_s16  ;;  %p170_p7 = scmp.lt.s32.totalorder %s164_s16, %s164_s16 }
  0x10   :  { %p171_p8 = por %p170_p7, %p169_p6 }
  0x12   :  { %p172_p9 = pnand %p171_p8, %p165_p5 }
  0x14   :  { %175 = shalt.err (!%p172_p9)
}
  0x15   :  { %37 = dma.hbm_to_vmem [thread:$0]  %s236_s1, 256, %s35_s12, [#allocation8]  }
  0x16   :  { %196 = dma.done.wait [#allocation5], 256  }
  0x17   :  { %197 = vsyncadd [#allocation5], 4294967040 }
  0x18   :  { %198 = dma.done.wait [#allocation8], 256  }
  0x19   :  { %199 = vsyncadd [#allocation8], 4294967040  ;;  %vm56_vm0 = vcmask 7168   ;;  %v204_v0 = vmov 0.0   ;;  %v59_v1 = vld [vmem:[#allocation4] sm:$0xff]  ;;  %v60_v2 = vld [vmem:[#allocation4 + $0x8] sm:$0xff] }
  0x1a   :  { %58 = vst.msk [vmem:[#allocation3] sm:$0xff] %vm56_vm0, %v204_v0  ;;  %57 = vst.msk [vmem:[#allocation2] sm:$0xff] %vm56_vm0, %v204_v0  ;;  %v61_v3 = vld [vmem:[#allocation7] sm:$0xff]  ;;  %v62_v4 = vld [vmem:[#allocation7 + $0x8] sm:$0xff]  ;;  %s205_s0 = smov [#allocation9]  }
  0x1b   :  { %v73_v5 = vadd.f32 %v61_v3, %v59_v1  ;;  %v74_v6 = vadd.f32 %v62_v4, %v60_v2  ;;  %v64_v7 = vmul.f32 %v61_v3, %v59_v1  ;;  %v65_v8 = vmul.f32 %v62_v4, %v60_v2  ;;  %s118_s1 = sshll.u32 %s205_s0, 4  ;;  %s119_s1 = int_to_ptr.vmem [resolvable:$true] %s118_s1 }
  0x1c   :  { %s176_s20 = scalar_lea.vmem %s119_s1, 128  ;;  %p181_p11 = scmp.lt.s32.totalorder %s119_s1, %s119_s1 }
  0x1d   :  { %v75_v9 = vadd.f32 %v74_v6, %v73_v5  ;;  %v66_v10 = vadd.f32 %v65_v8, %v64_v7  ;;  %p177_p10 = scmp.ne.s32.totalorder %s119_s1, %s176_s20  ;;  %p182_p12 = scmp.lt.s32.totalorder %s176_s20, %s176_s20 }
  0x1f   :  { %76 = vadd.xlane.f32.xlu0 %v75_v9  ;;  %p183_p13 = por %p182_p12, %p181_p11 }
  0x21   :  { %v72_v11 = vld [vmem:[#allocation3] sm:$0xff]  ;;  %v63_v14 = vld [vmem:[#allocation2] sm:$0xff]  ;;  %p184_p0 = pnand %p183_p13, %p177_p10 }
  0x23   :  { %67 = vadd.xlane.f32.xlu0 %v66_v10 }
  0xa8   :  { %v77_v12 = vpop.xlane.xlu0 %76 }
  0xa9   :  { %v78_v13 = vadd.f32 %v77_v12, %v72_v11 }
  0xab   :  { %79 = vst.msk [vmem:[#allocation3] sm:$0xff] %vm56_vm0, %v78_v13 }
  0xac   :  { %v68_v15 = vpop.xlane.xlu0 %67 }
  0xad   :  { %v69_v16 = vadd.f32 %v68_v15, %v63_v14 }
  0xaf   :  { %71 = vst.msk [vmem:[#allocation2] sm:$0xff] %vm56_vm0, %v69_v16 }
  0xb2   :  { %v86_v17 = vld [vmem:[#allocation3] sm:$0xff] }
  0xb3   :  { %v87_v18 = vadd.f32 1.0, %v86_v17 }
  0xb5   :  { %134 = vrcp.f32 %v87_v18 }
  0xb6   :  { %v83_v19 = vld [vmem:[#allocation2] sm:$0xff] }
  0xb7   :  { %v84_v20 = vmul.f32 2.0, %v83_v19 }
  0xb9   :  { %v85_v21 = vadd.f32 1.0, %v84_v20 }
  0xc2   :  { %v135_v22 = vpop.eup %134 }
  0xc3   :  { %v89_v23 = vmul.f32 %v135_v22, %v85_v21 }
  0xc5   :  { %v99_v24 = vsel %vm56_vm0, %v89_v23, 0.0 }
  0xc6   :  { %100 = vadd.xlane.f32.xlu1 %v99_v24 }
 0x14f   :  { %v101_v25 = vpop.xlane.xlu1 %100 }
 0x150   :  { %v102_v26 = vrot.slane %v101_v25, 4 }
 0x152   :  { %v103_v27 = vadd.f32 %v102_v26, %v101_v25 }
 0x154   :  { %v104_v28 = vrot.slane %v103_v27, 2 }
 0x156   :  { %v105_v29 = vadd.f32 %v104_v28, %v103_v27 }
 0x158   :  { %v106_v30 = vrot.slane %v105_v29, 1 }
 0x15a   :  { %v107_v31 = vadd.f32 %v106_v30, %v105_v29 }
 0x15c   :  { %128 = vpush %v107_v31 }
 0x18d   :  { %s129_s19 = spop %128 }
 0x18e   :  { %v109_v32 = vstv %s129_s19 }
 0x18f   :  { %111 = vst [vmem:[#allocation9] sm:$0xff] %v109_v32 }
 0x190   :  { %187 = shalt.err (!%p184_p0)
}
 0x191   :  { %121 = dma.vmem_to_hbm [thread:$0]  %s119_s1, 128, %s237_s2, [#allocation6]  }
 0x192   :  { %200 = dma.done.wait [#allocation6], 128  }
 0x193   :  { %201 = vsyncadd [#allocation6], 4294967168 }
 0x194   :  { %125 = vsyncpa [#allocation5], 1 }
 0x195   :  { %126 = vsyncpa [#allocation8], 1 }
 0x196   :  { %127 = vsyncpa [#allocation6], 1 }

</bundles_post_ra>
